<compile_context>
chip_gen: v6e
topology: v6e:2x2x1
jax: 0.10.0
libtpu: 0.0.40
codegen_flags: <defaults>
</compile_context>

<pallas_src>
import jax
import jax.numpy as jnp
from jax.experimental import pallas as pl
from jax.experimental.pallas import tpu as pltpu


def gcn_kernel(x_ref, w1_ref, b1_ref, w2_ref, o_ref):
    # x_ref : (S, B*N)    state along sublanes, batch*node stacked along lanes
    # w1_ref: (B*N, B*N)  kron(I_B, W1^T)  (conv1, pre-transposed, block-diag)
    # b1_ref: (1, B*N)    conv1 bias tiled over the B batch copies
    # w2_ref: (S, S)      conv2 weight (bias=False)
    # o_ref : (S, B*N)
    x = x_ref[...]

    # conv1: contract the node axis (block-diagonal over the batch copies).
    h = jnp.dot(x, w1_ref[...], preferred_element_type=jnp.float32)
    h = h + b1_ref[...]                       # (1, B*N) row broadcast

    # residual + ReLU (VPU)
    h = jnp.maximum(h + x, 0.0)

    # conv2: contract the state axis.
    out = jnp.dot(w2_ref[...], h, preferred_element_type=jnp.float32)
    o_ref[...] = out.astype(o_ref.dtype)


def gcn_forward(x, w1, b1, w2):
    """x: (B, num_state, num_node); w1: (N, N); b1: (N,); w2: (S, S)."""
    B, S, N = x.shape
    BN = B * N

    # One-time layout plumbing in XLA, outside the kernel:
    #   (B, S, N) -> (S, B*N)
    x2 = jnp.transpose(x, (1, 0, 2)).reshape(S, BN)
    # conv1 weight: pre-transposed (so the kernel contracts on the last dim,
    # no in-kernel .T) and expanded to a block-diagonal over the B batch
    # copies stacked along the lane axis.
    w1bd = jnp.kron(jnp.eye(B, dtype=w1.dtype), w1.T)      # (B*N, B*N)
    b1t = jnp.tile(b1, B).reshape(1, BN)                   # (1, B*N)

    out2 = pl.pallas_call(
        gcn_kernel,
        out_shape=jax.ShapeDtypeStruct((S, BN), x.dtype),
        grid_spec=pltpu.PrefetchScalarGridSpec(
            num_scalar_prefetch=0,
            grid=(1,),                                     # single step
            in_specs=[
                pl.BlockSpec((S, BN), lambda i: (0, 0)),   # x slab
                pl.BlockSpec((BN, BN), lambda i: (0, 0)),  # conv1 block-diag W
                pl.BlockSpec((1, BN), lambda i: (0, 0)),   # conv1 bias
                pl.BlockSpec((S, S), lambda i: (0, 0)),    # conv2 weight
            ],
            out_specs=pl.BlockSpec((S, BN), lambda i: (0, 0)),
        ),
        # Single grid step -> nothing to shard across TensorCores or pipeline.
        compiler_params=pltpu.CompilerParams(
            dimension_semantics=("arbitrary",)),
    )(x2, w1bd, b1t, w2)

    # (S, B*N) -> (B, S, N)
    return jnp.transpose(out2.reshape(S, B, N), (1, 0, 2))


def gcn_reference(x, w1, b1, w2):
    # pure-JAX reference mirroring the PyTorch forward
    h = jnp.einsum("bsj,nj->bsn", x, w1) + b1[None, None, :]
    h = jax.nn.relu(h + x)
    return jnp.einsum("ts,bsn->btn", w2, h)


if __name__ == "__main__":
    # small shapes consistent with the module: B=2, num_state=32, num_node=16
    B, num_state, num_node = 2, 32, 16

    key = jax.random.PRNGKey(0)
    kx, kw1, kb1, kw2 = jax.random.split(key, 4)

    x = jax.random.normal(kx, (B, num_state, num_node), dtype=jnp.float32)
    # conv1: nn.Conv1d(num_node, num_node, k=1, bias=True) -> weight (N,N,1), bias (N,)
    w1 = jax.random.normal(kw1, (num_node, num_node), dtype=jnp.float32) * 0.1
    b1 = jax.random.normal(kb1, (num_node,), dtype=jnp.float32) * 0.1
    # conv2: nn.Conv1d(num_state, num_state, k=1, bias=False) -> weight (S,S,1)
    w2 = jax.random.normal(kw2, (num_state, num_state), dtype=jnp.float32) * 0.1

    out = gcn_forward(x, w1, b1, w2)
    out = jax.block_until_ready(out)

    ref = gcn_reference(x, w1, b1, w2)
    assert out.shape == (B, num_state, num_node)
    assert jnp.allclose(out, ref, atol=1e-4, rtol=1e-4)

    print("KERNEL_OK")
</pallas_src>

<mosaic_0001>
module attributes {stable_mosaic.version = 11 : i64} {
  func.func @gcn_kernel(%arg0: i32, %arg1: memref<32x32xf32, #tpu.memory_space<vmem>>, %arg2: memref<32x32xf32, #tpu.memory_space<vmem>>, %arg3: memref<1x32xf32, #tpu.memory_space<vmem>>, %arg4: memref<32x32xf32, #tpu.memory_space<vmem>>, %arg5: memref<32x32xf32, #tpu.memory_space<vmem>>) attributes {dimension_semantics = [#tpu.dimension_semantics<arbitrary>], iteration_bounds = array<i64: 1>, scalar_prefetch = 0 : i64, scratch_operands = 0 : i64, tpu.core_type = #tpu.core_type<tc>, window_params = [{pipeline_mode = #tpu.pipeline_mode<synchronous>, transform_indices = @transform_0, window_bounds = array<i64: 32, 32>}, {pipeline_mode = #tpu.pipeline_mode<synchronous>, transform_indices = @transform_1, window_bounds = array<i64: 32, 32>}, {pipeline_mode = #tpu.pipeline_mode<synchronous>, transform_indices = @transform_2, window_bounds = array<i64: 1, 32>}, {pipeline_mode = #tpu.pipeline_mode<synchronous>, transform_indices = @transform_3, window_bounds = array<i64: 32, 32>}, {pipeline_mode = #tpu.pipeline_mode<synchronous>, transform_indices = @transform_4, window_bounds = array<i64: 32, 32>}]} {
    %c0 = arith.constant 0 : index
    %c0_0 = arith.constant 0 : index
    %0 = vector.load %arg1[%c0, %c0_0] : memref<32x32xf32, #tpu.memory_space<vmem>>, vector<32x32xf32>
    %c0_1 = arith.constant 0 : index
    %c0_2 = arith.constant 0 : index
    %1 = vector.load %arg2[%c0_1, %c0_2] : memref<32x32xf32, #tpu.memory_space<vmem>>, vector<32x32xf32>
    %cst = arith.constant dense<0.000000e+00> : vector<32x32xf32>
    %2 = tpu.matmul %0, %1, %cst {dimension_numbers = #tpu.dot_dimension_numbers<[1], [0], [0], [1], [0, 0, 1, 1], [], []>} : vector<32x32xf32>, vector<32x32xf32>, vector<32x32xf32> -> vector<32x32xf32>
    %c0_3 = arith.constant 0 : index
    %c0_4 = arith.constant 0 : index
    %3 = vector.load %arg3[%c0_3, %c0_4] : memref<1x32xf32, #tpu.memory_space<vmem>>, vector<1x32xf32>
    %4 = vector.broadcast %3 : vector<1x32xf32> to vector<32x32xf32>
    %5 = arith.addf %2, %4 : vector<32x32xf32>
    %6 = arith.addf %5, %0 : vector<32x32xf32>
    %cst_5 = arith.constant 0.000000e+00 : f32
    %7 = vector.broadcast %cst_5 : f32 to vector<32x32xf32>
    %8 = arith.maximumf %6, %7 : vector<32x32xf32>
    %c0_6 = arith.constant 0 : index
    %c0_7 = arith.constant 0 : index
    %9 = vector.load %arg4[%c0_6, %c0_7] : memref<32x32xf32, #tpu.memory_space<vmem>>, vector<32x32xf32>
    %cst_8 = arith.constant dense<0.000000e+00> : vector<32x32xf32>
    %10 = tpu.matmul %9, %8, %cst_8 {dimension_numbers = #tpu.dot_dimension_numbers<[1], [0], [0], [1], [0, 0, 1, 1], [], []>} : vector<32x32xf32>, vector<32x32xf32>, vector<32x32xf32> -> vector<32x32xf32>
    %c0_9 = arith.constant 0 : index
    %c0_10 = arith.constant 0 : index
    %11 = vector.load %arg5[%c0_9, %c0_10] : memref<32x32xf32, #tpu.memory_space<vmem>>, vector<32x32xf32>
    tpu.vector_store %arg5[%c0_9, %c0_10], %10 {strides = array<i32>} : memref<32x32xf32, #tpu.memory_space<vmem>>, vector<32x32xf32>,
    return
  }
  func.func @transform_0(%arg0: i32) -> (i32, i32) {
    %c0_i32 = arith.constant 0 : i32
    %c0_i32_0 = arith.constant 0 : i32
    %c0_i32_1 = arith.constant 0 : i32
    return %c0_i32, %c0_i32_0 : i32, i32
  }
  func.func @transform_1(%arg0: i32) -> (i32, i32) {
    %c0_i32 = arith.constant 0 : i32
    %c0_i32_0 = arith.constant 0 : i32
    %c0_i32_1 = arith.constant 0 : i32
    return %c0_i32, %c0_i32_0 : i32, i32
  }
  func.func @transform_2(%arg0: i32) -> (i32, i32) {
    %c0_i32 = arith.constant 0 : i32
    %c0_i32_0 = arith.constant 0 : i32
    %c0_i32_1 = arith.constant 0 : i32
    return %c0_i32, %c0_i32_0 : i32, i32
  }
  func.func @transform_3(%arg0: i32) -> (i32, i32) {
    %c0_i32 = arith.constant 0 : i32
    %c0_i32_0 = arith.constant 0 : i32
    %c0_i32_1 = arith.constant 0 : i32
    return %c0_i32, %c0_i32_0 : i32, i32
  }
  func.func @transform_4(%arg0: i32) -> (i32, i32) {
    %c0_i32 = arith.constant 0 : i32
    %c0_i32_0 = arith.constant 0 : i32
    %c0_i32_1 = arith.constant 0 : i32
    return %c0_i32, %c0_i32_0 : i32, i32
  }
}

</mosaic_0001>

<bundles_post_ra>
// kernel: tpu_custom_call.1
= control target key start
LH: loop header
LB: loop body
LE: loop exit
PB: predicated region body
PF: predicated region fallthrough
CT: control target
= control target key end

     0   :  { %9 = vsyncpa [#allocation3], 0  ;;  %s518_s0 = inlined_call_operand.hbm [shape: f32[32,32], index: 0, kind: input, shape index: {}]   ;;  %s519_s1 = inlined_call_operand.hbm [shape: f32[32,32], index: 1, kind: input, shape index: {}]   ;;  %s520_s2 = inlined_call_operand.vmem [shape: f32[1,32], index: 2, kind: input, shape index: {}]   ;;  %s521_s3 = inlined_call_operand.hbm [shape: f32[32,32], index: 3, kind: input, shape index: {}]   ;;  %s522_s4 = inlined_call_operand.hbm [shape: f32[32,32], index: 4, kind: output, shape index: {}]  }
   0x1   :  { %10 = vsyncpa [#allocation6], 0 }
   0x2   :  { %11 = vsyncpa [#allocation4], 0  ;;  %s448_s15 = smov [#allocation5]   ;;  %s449_s17 = smov [#allocation2]  }
   0x3   :  { %s29_s16 = sshll.u32 %s448_s15, 4  ;;  %s17_s18 = sshll.u32 %s449_s17, 4  ;;  %s30_s16 = int_to_ptr.vmem [resolvable:$true] %s29_s16  ;;  %s18_s18 = int_to_ptr.vmem [resolvable:$true] %s17_s18 }
   0x4   :  { %s370_s19 = scalar_lea.vmem %s30_s16, 512  ;;  %p375_p1 = scmp.lt.s32.totalorder %s30_s16, %s30_s16 }
   0x5   :  { %p371_p0 = scmp.ne.s32.totalorder %s30_s16, %s370_s19  ;;  %p376_p2 = scmp.lt.s32.totalorder %s370_s19, %s370_s19 }
   0x7   :  { %p377_p3 = por %p376_p2, %p375_p1 }
   0x9   :  { %p378_p4 = pnand %p377_p3, %p371_p0 }
   0xb   :  { %381 = shalt.err (!%p378_p4)
}
   0xc   :  { %s450_s20 = smov 128   ;;  %s451_s21 = smov 8  }
   0xd   :  { %35 = dma.hbm_to_vmem [thread:$0]  %s519_s1, 512, %s30_s16, [#allocation6], %s450_s20, %s450_s20, %s451_s21  }
   0xe   :  { %s390_s24 = scalar_lea.vmem %s18_s18, 512  ;;  %p395_p6 = scmp.lt.s32.totalorder %s18_s18, %s18_s18 }
   0xf   :  { %p391_p5 = scmp.ne.s32.totalorder %s18_s18, %s390_s24  ;;  %p396_p7 = scmp.lt.s32.totalorder %s390_s24, %s390_s24 }
  0x11   :  { %p397_p8 = por %p396_p7, %p395_p6 }
  0x13   :  { %p398_p9 = pnand %p397_p8, %p391_p5 }
  0x15   :  { %401 = shalt.err (!%p398_p9)
}
  0x16   :  { %23 = dma.hbm_to_vmem [thread:$0]  %s518_s0, 512, %s18_s18, [#allocation3], %s450_s20, %s450_s20, %s451_s21  }
  0x17   :  { %s452_s27 = smov [#allocation7]  }
  0x18   :  { %s43_s28 = sshll.u32 %s452_s27, 4  ;;  %s44_s28 = int_to_ptr.vmem [resolvable:$true] %s43_s28 }
  0x19   :  { %s410_s29 = scalar_lea.vmem %s44_s28, 512  ;;  %p415_p11 = scmp.lt.s32.totalorder %s44_s28, %s44_s28 }
  0x1a   :  { %p411_p10 = scmp.ne.s32.totalorder %s44_s28, %s410_s29  ;;  %p416_p12 = scmp.lt.s32.totalorder %s410_s29, %s410_s29 }
  0x1c   :  { %p417_p13 = por %p416_p12, %p415_p11 }
  0x1e   :  { %p418_p0 = pnand %p417_p13, %p411_p10 }
  0x20   :  { %421 = shalt.err (!%p418_p0)
}
  0x21   :  { %49 = dma.hbm_to_vmem [thread:$0]  %s521_s3, 512, %s44_s28, [#allocation6], %s450_s20, %s450_s20, %s451_s21  }
  0x22   :  { %442 = dma.done.wait [#allocation3], 512  }
  0x23   :  { %443 = vsyncadd [#allocation3], 4294966784 }
  0x24   :  { %444 = dma.done.wait [#allocation6], 1024  }
  0x25   :  { %445 = vsyncadd [#allocation6], 4294966272  ;;  %vm74_vm0 = vcmask 261120   ;;  %v66_v0 = vld [vmem:[#allocation5 + $0x18] sm:$0xff]  ;;  %v65_v1 = vld [vmem:[#allocation5 + $0x10] sm:$0xff] }
  0x26   :  { %328 = vmatprep.subr.mxu0 %v66_v0  ;;  %v59_v2 = vld [vmem:[#allocation2] sm:$0xff]  ;;  %v64_v3 = vld [vmem:[#allocation5 + $0x8] sm:$0xff]  ;;  %v61_v6 = vld [vmem:[#allocation2 + $0x10] sm:$0xff] }
  0x27   :  { %329 = vmatpush3.msra.mxu0 %v66_v0  ;;  %336 = vmatprep.mubr.msk.f32.mxu0 %vm74_vm0, %v59_v2  ;;  %v63_v4 = vld [vmem:[#allocation5] sm:$0xff]  ;;  %v60_v5 = vld [vmem:[#allocation2 + $0x8] sm:$0xff]  ;;  %v62_v7 = vld [vmem:[#allocation2 + $0x18] sm:$0xff] }
  0x28   :  { %330 = vmatprep.subr.mxu0 %v65_v1  ;;  %v180_v8 = vld [vmem:[#allocation7] sm:$0xff]  ;;  %v181_v26 = vld [vmem:[#allocation7 + $0x8] sm:$0xff]  ;;  %v182_v27 = vld [vmem:[#allocation7 + $0x10] sm:$0xff] }
  0x29   :  { %331 = vmatpush3.msra.mxu0 %v65_v1  ;;  %350 = vmatprep.mubr.msk.f32.mxu1 %vm74_vm0, %v180_v8  ;;  %v303_v10 = vld [vmem:[%s520_s2] ss:$0 sm:$0xff]  ;;  %v183_v28 = vld [vmem:[#allocation7 + $0x18] sm:$0xff]  ;;  %s453_s2 = smov [#allocation8]  }
  0x2a   :  { %332 = vmatprep.subr.mxu0 %v64_v3  ;;  %s290_s5 = sshll.u32 %s453_s2, 4  ;;  %s291_s5 = int_to_ptr.vmem [resolvable:$true] %s290_s5 }
  0x2b   :  { %333 = vmatpush3.msra.mxu0 %v64_v3  ;;  %s422_s6 = scalar_lea.vmem %s291_s5, 512  ;;  %p427_p2 = scmp.lt.s32.totalorder %s291_s5, %s291_s5 }
  0x2c   :  { %334 = vmatprep.subr.mxu0 %v63_v4  ;;  %p423_p1 = scmp.ne.s32.totalorder %s291_s5, %s422_s6  ;;  %p428_p3 = scmp.lt.s32.totalorder %s422_s6, %s422_s6 }
  0x2d   :  { %335 = vmatpush3.msra.mxu0 %v63_v4 }
  0x2e   :  { %337 = vmatmul.mubr.msk.f32.vlgmr.msra.gmra.mxu0 %vm74_vm0, %v60_v5  ;;  %p429_p4 = por %p428_p3, %p427_p2 }
  0x2f   :  { %339 = vmatprep.mubr.msk.f32.mxu0 %vm74_vm0, %v61_v6 }
  0x30   :  { %p430_p5 = pnand %p429_p4, %p423_p1 }
  0x32   :  { %340 = vmatmul.mubr.msk.f32.gmra.mxu0 %vm74_vm0, %v62_v7 }
  0xee   :  { %v338_v9 = vpop.f32.mrf.mxu0 }
  0xef   :  { %v159_v13 = vadd.f32 %v338_v9, %v303_v10 }
  0xf0   :  { %v153_v11 = vpop.f32.mrf.mxu0 }
  0xf1   :  { %v154_v16 = vadd.f32 %v303_v10, %v153_v11  ;;  %v173_v19 = vadd.f32 %v159_v13, %v60_v5 }
  0xf2   :  { %v341_v12 = vpop.f32.mrf.mxu0 }
  0xf3   :  { %v169_v14 = vadd.f32 %v341_v12, %v303_v10  ;;  %v172_v22 = vadd.f32 %v154_v16, %v59_v2  ;;  %v177_v24 = vmax.f32 %v173_v19, 0.0 }
  0xf4   :  { %v163_v15 = vpop.f32.mrf.mxu0 }
  0xf5   :  { %v164_v17 = vadd.f32 %v303_v10, %v163_v15  ;;  %v175_v18 = vadd.f32 %v169_v14, %v62_v7  ;;  %v176_v25 = vmax.f32 %v172_v22, 0.0 }
  0xf7   :  { %v174_v20 = vadd.f32 %v164_v17, %v61_v6  ;;  %v179_v21 = vmax.f32 %v175_v18, 0.0 }
  0xf9   :  { %v178_v23 = vmax.f32 %v174_v20, 0.0  ;;  %342 = vmatprep.subr.mxu1 %v179_v21 }
  0xfa   :  { %343 = vmatpush3.msra.mxu1 %v179_v21 }
  0xfb   :  { %344 = vmatprep.subr.mxu1 %v178_v23 }
  0xfc   :  { %345 = vmatpush3.msra.mxu1 %v178_v23 }
  0xfd   :  { %346 = vmatprep.subr.mxu1 %v177_v24 }
  0xfe   :  { %347 = vmatpush3.msra.mxu1 %v177_v24 }
  0xff   :  { %348 = vmatprep.subr.mxu1 %v176_v25 }
 0x100   :  { %349 = vmatpush3.msra.mxu1 %v176_v25 }
 0x101   :  { %351 = vmatmul.mubr.msk.f32.vlgmr.msra.gmra.mxu1 %vm74_vm0, %v181_v26 }
 0x102   :  { %353 = vmatprep.mubr.msk.f32.mxu1 %vm74_vm0, %v182_v27 }
 0x105   :  { %354 = vmatmul.mubr.msk.f32.gmra.mxu1 %vm74_vm0, %v183_v28 }
 0x1c1   :  { %v352_v29 = vpop.f32.mrf.mxu1 }
 0x1c2   :  { %282 = vst.msk [vmem:[#allocation8 + $0x8] sm:$0xff] %vm74_vm0, %v352_v29 }
 0x1c3   :  { %v262_v30 = vpop.f32.mrf.mxu1 }
 0x1c4   :  { %281 = vst.msk [vmem:[#allocation8] sm:$0xff] %vm74_vm0, %v262_v30 }
 0x1c5   :  { %v355_v31 = vpop.f32.mrf.mxu1 }
 0x1c6   :  { %284 = vst.msk [vmem:[#allocation8 + $0x18] sm:$0xff] %vm74_vm0, %v355_v31 }
 0x1c7   :  { %v272_v32 = vpop.f32.mrf.mxu1 }
 0x1c8   :  { %283 = vst.msk [vmem:[#allocation8 + $0x10] sm:$0xff] %vm74_vm0, %v272_v32 }
 0x1c9   :  { %433 = shalt.err (!%p430_p5)
}
 0x1ca   :  { %296 = dma.vmem_to_hbm [thread:$0]  %s291_s5, 512, %s522_s4, [#allocation4], %s450_s20, %s450_s20, %s451_s21  }
 0x1cb   :  { %446 = dma.done.wait [#allocation4], 512  }
 0x1cc   :  { %447 = vsyncadd [#allocation4], 4294966784 }
 0x1cd   :  { %300 = vsyncpa [#allocation3], 1 }
 0x1ce   :  { %301 = vsyncpa [#allocation6], 1 }
 0x1cf   :  { %302 = vsyncpa [#allocation4], 1 }

</bundles_post_ra>
